<compile_context>
chip_gen: v7x
topology: tpu7x:2x2x1
jax: 0.10.0
libtpu: 0.0.40
codegen_flags: <defaults>
</compile_context>

<pallas_src>
import functools

import jax
import jax.numpy as jnp
from jax import lax
from jax.experimental import pallas as pl
from jax.experimental.pallas import tpu as pltpu
from jax.scipy.special import gammaln

PRECISION = 1e-5

# MODEL_PARAM_DICT['xaj_mz']['param_range'] (standard torchhydro ranges, defined in-script)
PARAM_RANGES = [
    ("K", 0.1, 1.0), ("B", 0.1, 0.4), ("IM", 0.01, 0.1), ("UM", 0.0, 20.0),
    ("LM", 60.0, 90.0), ("DM", 60.0, 120.0), ("C", 0.0, 0.2), ("SM", 1.0, 100.0),
    ("EX", 1.0, 1.5), ("KI", 0.0, 0.7), ("KG", 0.0, 0.7), ("A", 0.0, 2.9),
    ("THETA", 0.0, 6.5), ("CI", 0.0, 0.9), ("CG", 0.98, 0.998),
]


def _safe_pow(base, p):
    """base ** p for base >= 0 via exp/log (EUP), numerically safe at base == 0."""
    return jnp.exp(p * jnp.log(jnp.maximum(base, 1e-30)))


# ----------------------------------------------------------------------------------------------
# Fused kernel: per-step XAJ generation (NN-ET + tension-water runoff + HF sources) + routing
# (gamma-UH causal conv via K-tap history + linear reservoirs).
# grid = (basin_blocks [parallel], time_chunks [arbitrary/sequential]); inner fori_loop over TS.
# ----------------------------------------------------------------------------------------------
def _xaj_fused_kernel(kernel_size, chunk_len,
                      xin_ref, const_ref, uh_ref, h1b_ref, w1v_ref,
                      w2_ref, b2_ref, w3_ref, b3_ref,
                      out_ref, state_scr, hist_scr):
    K = kernel_size
    Kh = max(K - 1, 1)
    tchunk = pl.program_id(1)

    cb = const_ref[...]                                      # [16, BB]
    b_p = cb[0:1]; im = cb[1:2]; um = cb[2:3]; lm = cb[3:4]; dm = cb[4:5]
    sm = cb[5:6]; ex = cb[6:7]; ki = cb[7:8]; kg = cb[8:9]
    ci = cb[12:13]; cg = cb[13:14]

    @pl.when(tchunk == 0)
    def _():                                                 # initial states (warmup_length == 0)
        state_scr[0:1] = cb[9:10]                            # w
        state_scr[1:2] = cb[10:11]                           # s
        state_scr[2:3] = cb[11:12]                           # fr
        state_scr[3:4] = cb[14:15]                           # qi
        state_scr[4:5] = cb[15:16]                           # qg
        hist_scr[...] = jnp.zeros_like(hist_scr)             # UH history (zeros before t=0)

    # per-chunk (time-invariant) values, hoisted out of the inner time loop
    wm = um + lm + dm
    wm_cap = wm - PRECISION
    wmm = wm * (1.0 + b_p)
    inv_b1 = 1.0 / (1.0 + b_p)
    ms = sm * (1.0 + ex)
    inv_ex1 = 1.0 / (1.0 + ex)
    one_m_im = 1.0 - im
    sm_cap = sm - PRECISION
    one_m_kikg = 1.0 - ki - kg

    uh_rows = tuple(uh_ref[j:j + 1] for j in range(K))       # K rows of [1, BB]
    h1_base = h1b_ref[...]                                   # [16, BB] hoisted um/lm/dm/b1 part
    w1v = w1v_ref[...]                                       # [16, 5] cols (prcp, pet, k, c, w0)
    w2 = w2_ref[...]; b2 = b2_ref[...]                       # [8, 16], [8, BB]
    w3 = w3_ref[...]; b3 = b3_ref[...]                       # [1, 8],  [1, BB]

    init = (state_scr[0:1], state_scr[1:2], state_scr[2:3],
            state_scr[3:4], state_scr[4:5],
            tuple(hist_scr[j:j + 1] for j in range(Kh)))

    def step(i, carry):
        w_st, s_st, fr_st, qi_st, qg_st, hist = carry
        x4 = xin_ref[i]                                      # [4, BB] = (prcp, pet, k, c)
        prcp = x4[0:1]; pet = x4[1:2]; k = x4[2:3]; c = x4[3:4]
        w0 = jnp.minimum(w_st, wm_cap)

        # --- NnModule4Hydro / SimpleAnn (8 -> 16 -> 8 -> 1), dropout = identity in eval ---
        x_var = jnp.concatenate([x4, w0], axis=0)            # [5, BB] time-varying features
        h1 = jnp.maximum(
            h1_base + jnp.dot(w1v, x_var, preferred_element_type=jnp.float32), 0.0)
        h2 = jnp.maximum(
            jnp.dot(w2, h1, preferred_element_type=jnp.float32) + b2, 0.0)
        z = jnp.dot(w3, h2, preferred_element_type=jnp.float32) + b3      # [1, BB]

        wp = w0 + prcp
        e = jnp.where(wp > PRECISION,
                      jnp.clip(z, 0.0, jnp.minimum(wp, k * pet)), 0.0)
        prcp_diff = prcp - e
        pe = jnp.maximum(prcp_diff, 0.0)

        # --- calculate_prcp_runoff (tension water capacity curve) ---
        a_c = wmm * (1.0 - _safe_pow(1.0 - w0 / wm, inv_b1))
        r_cal = jnp.where(
            pe > 0.0,
            jnp.where(pe + a_c < wmm,
                      pe - (wm - w0)
                      + wm * _safe_pow(1.0 - jnp.minimum(a_c + pe, wmm) / wmm, 1.0 + b_p),
                      pe - (wm - w0)),
            0.0)
        r = jnp.maximum(r_cal, 0.0)
        rim = jnp.maximum(pe * im, 0.0)

        # --- xaj_sources (book="HF", source_type="sources") ---
        # NOTE: when r == 0 the previous period's fr is carried (torchhydro xaj_sources).
        fr = jnp.where(r > 0.0, r / jnp.maximum(pe, PRECISION), fr_st)
        fr = jnp.clip(fr, PRECISION, 1.0)
        ss = jnp.minimum(fr_st * s_st / fr, sm_cap)
        au = ms * (1.0 - _safe_pow(1.0 - ss / sm, inv_ex1))
        rs = jnp.where(
            pe > 0.0,
            jnp.where(pe + au < ms,
                      fr * (pe - sm + ss
                            + sm * _safe_pow(1.0 - jnp.minimum(pe + au, ms) / ms, 1.0 + ex)),
                      fr * (pe + ss - sm)),
            0.0)
        rs = jnp.minimum(rs, r)
        s_new = jnp.minimum(ss + (r - rs) / fr, sm)
        ri = ki * s_new * fr
        rg = kg * s_new * fr
        s_next = s_new * one_m_kikg

        # --- calculate_1layer_w_storage ---
        w_next = jnp.clip(w0 + prcp_diff - r, 0.0, wm_cap)

        rss = rs * one_m_im
        ris = ri * one_m_im
        rgs = rg * one_m_im
        rimrss = rim + rss                                   # runoff_im + rss

        # --- routing: gamma-UH causal convolution (K-tap history) + linear reservoirs ---
        q_conv = uh_rows[0] * rimrss
        for j in range(1, K):                                # static unroll over kernel_size
            q_conv = q_conv + uh_rows[j] * hist[j - 1]
        qi_next = ci * qi_st + (1.0 - ci) * ris
        qg_next = cg * qg_st + (1.0 - cg) * rgs

        out_ref[i] = jnp.concatenate([q_conv + qi_next + qg_next, e], axis=0)   # [2, BB]

        if K > 1:
            hist = (rimrss,) + hist[:K - 2]
        return (w_next, s_next, fr, qi_next, qg_next, hist)

    w_f, s_f, fr_f, qi_f, qg_f, hist_f = lax.fori_loop(0, chunk_len, step, init)

    state_scr[0:1] = w_f
    state_scr[1:2] = s_f
    state_scr[2:3] = fr_f
    state_scr[3:4] = qi_f
    state_scr[4:5] = qg_f
    for j in range(Kh):
        hist_scr[j:j + 1] = hist_f[j]


# ----------------------------------------------------------------------------------------------
# Glue: parameter rescaling, gamma unit hydrograph, NN weight hoisting, padding, pallas_call
# ----------------------------------------------------------------------------------------------
def init_nn_weights(key):
    """SimpleAnn(nx=7+1, ny=1, hidden=[16, 8]); weights stored as h = W @ x (transposed Linear)."""
    k1, k2, k3 = jax.random.split(key, 3)
    w1 = 0.05 * jax.random.normal(k1, (16, 8), jnp.float32)
    b1 = jnp.zeros((16, 1), jnp.float32)
    w2 = 0.05 * jax.random.normal(k2, (8, 16), jnp.float32)
    b2 = jnp.zeros((8, 1), jnp.float32)
    w3 = 0.05 * jax.random.normal(k3, (1, 8), jnp.float32)
    b3 = jnp.full((1, 1), 0.5, jnp.float32)
    return (w1, b1, w2, b2, w3, b3)


def _scale(p, lo, hi):
    return lo + p * (hi - lo)


@functools.partial(jax.jit, static_argnames=("kernel_size", "warmup_length"))
def xaj_dpl_forward(p_and_e, parameters_ts, nn_weights, kernel_size=3, warmup_length=0):
    # TODO(synk): the recursive torch.no_grad() warmup pass is not replicated; only warmup_length=0.
    assert warmup_length == 0
    T, B, _ = p_and_e.shape
    f32 = jnp.float32
    rngd = {name: (lo, hi) for name, lo, hi in PARAM_RANGES}

    # --- lane padding: basins on the lane axis, padded to a multiple of 128 ---
    Bpad = ((B + 127) // 128) * 128
    pe_in = p_and_e.astype(f32)
    pts = parameters_ts.astype(f32)
    if Bpad != B:
        pe_in = jnp.pad(pe_in, ((0, 0), (0, Bpad - B), (0, 0)))
        pts = jnp.pad(pts, ((0, 0), (0, Bpad - B), (0, 0)), constant_values=0.5)

    params = pts[-1]                                        # param_test_way = "time_varying"
    # param_var_index = [0, 6] -> K and C are time-varying, the rest use the last time step.
    ks = _scale(pts[:, :, 0], *rngd["K"])                   # [T, Bpad]
    cs = _scale(pts[:, :, 6], *rngd["C"])                   # [T, Bpad]
    bs = _scale(params[:, 1], *rngd["B"])
    im = _scale(params[:, 2], *rngd["IM"])
    um = _scale(params[:, 3], *rngd["UM"])
    lm = _scale(params[:, 4], *rngd["LM"])
    dm = _scale(params[:, 5], *rngd["DM"])
    sm = _scale(params[:, 7], *rngd["SM"])
    ex = _scale(params[:, 8], *rngd["EX"])
    ki_ = _scale(params[:, 9], *rngd["KI"])
    kg_ = _scale(params[:, 10], *rngd["KG"])
    ksum = ki_ + kg_
    ki = jnp.where(ksum < 1.0, ki_, (1.0 - PRECISION) / ksum * ki_)
    kg = jnp.where(ksum < 1.0, kg_, (1.0 - PRECISION) / ksum * kg_)
    a = _scale(params[:, 11], *rngd["A"])
    theta = _scale(params[:, 12], *rngd["THETA"])
    ci = _scale(params[:, 13], *rngd["CI"])
    cg = _scale(params[:, 14], *rngd["CG"])

    # initial states (warmup_length == 0, et_output == 1)
    w0i = 0.5 * (um + lm + dm)
    s0i = 0.5 * sm
    fr0i = jnp.full((Bpad,), 0.1, f32)
    qi0i = jnp.full((Bpad,), 0.1, f32)
    qg0i = jnp.full((Bpad,), 0.1, f32)

    # KernelConv / uh_gamma: gamma-distribution unit hydrograph weights [K, Bpad]
    a_uh = jnp.maximum(a, 0.0) + 0.1
    th_uh = jnp.maximum(theta, 0.0) + 0.5
    tg = (jnp.arange(kernel_size, dtype=f32) + 0.5)[:, None]                  # [K, 1]
    denom = jnp.exp(gammaln(a_uh))[None, :] * (th_uh[None, :] ** a_uh[None, :])
    w_uh = (tg ** (a_uh[None, :] - 1.0)) * jnp.exp(-tg / th_uh[None, :]) / denom
    uh = (w_uh / jnp.sum(w_uh, axis=0, keepdims=True)).astype(f32)            # [K, Bpad]

    const = jnp.stack([bs, im, um, lm, dm, sm, ex, ki, kg,
                       w0i, s0i, fr0i, ci, cg, qi0i, qg0i], axis=0).astype(f32)   # [16, Bpad]

    # packed per-step inputs (one DMA stream): rows (prcp, pet, K, C)
    prcp = jnp.maximum(pe_in[:, :, 0], 0.0)
    pet = jnp.maximum(pe_in[:, :, 1], 0.0)
    xin = jnp.stack([prcp, pet, ks, cs], axis=1).astype(f32)                  # [T, 4, Bpad]

    # NN weights: hoist constant (um, lm, dm, bias) layer-1 contribution into h1_base
    w1, b1, w2, b2, w3, b3 = [w.astype(f32) for w in nn_weights]
    x_const = jnp.stack([um, lm, dm], axis=0)                                 # [3, Bpad]
    h1_base = jnp.dot(w1[:, 1:4], x_const) + b1                               # [16, Bpad]
    w1v = w1[:, jnp.array([6, 7, 0, 4, 5])]                                   # cols (prcp,pet,k,c,w0)
    b2b = jnp.broadcast_to(b2, (b2.shape[0], Bpad))                           # [8, Bpad]
    b3b = jnp.broadcast_to(b3, (1, Bpad))                                     # [1, Bpad]

    # --- time chunking ---
    ts = T if T <= 256 else 256
    n_chunks = -(-T // ts)
    Tpad = n_chunks * ts
    if Tpad != T:
        xin = jnp.pad(xin, ((0, Tpad - T), (0, 0), (0, 0)))

    # --- basin blocking (leading "parallel" grid axis; megacore sharding on v7x) ---
    BB = 256 if (Bpad % 256 == 0) else 128
    n_bb = Bpad // BB
    Kh = max(kernel_size - 1, 1)

    kernel = functools.partial(_xaj_fused_kernel, kernel_size, ts)
    out = pl.pallas_call(
        kernel,
        out_shape=jax.ShapeDtypeStruct((Tpad, 2, Bpad), f32),
        grid=(n_bb, n_chunks),
        in_specs=[
            pl.BlockSpec((ts, 4, BB), lambda bi, ci: (ci, 0, bi)),      # packed inputs
            pl.BlockSpec((16, BB), lambda bi, ci: (0, bi)),             # static params + init states
            pl.BlockSpec((kernel_size, BB), lambda bi, ci: (0, bi)),    # UH weights
            pl.BlockSpec((16, BB), lambda bi, ci: (0, bi)),             # h1_base
            pl.BlockSpec(w1v.shape, lambda bi, ci: (0, 0)),             # [16, 5]
            pl.BlockSpec(w2.shape, lambda bi, ci: (0, 0)),              # [8, 16]
            pl.BlockSpec((b2.shape[0], BB), lambda bi, ci: (0, bi)),    # [8, BB]
            pl.BlockSpec(w3.shape, lambda bi, ci: (0, 0)),              # [1, 8]
            pl.BlockSpec((1, BB), lambda bi, ci: (0, bi)),              # [1, BB]
        ],
        out_specs=pl.BlockSpec((ts, 2, BB), lambda bi, ci: (ci, 0, bi)),
        scratch_shapes=[pltpu.VMEM((8, BB), f32),       # states: w, s, fr, qi, qg (+pad)
                        pltpu.VMEM((Kh, BB), f32)],     # UH ring history (last K-1 rimrss rows)
        compiler_params=pltpu.CompilerParams(
            dimension_semantics=("parallel", "arbitrary"),
            vmem_limit_bytes=32 * 1024 * 1024),
    )(xin, const, uh, h1_base, w1v, w2, b2b, w3, b3b)

    q_sim = out[:T, 0, :B][..., None]                                     # [T, B, 1]
    es = out[:T, 1, :B][..., None]                                        # [T, B, 1]
    return q_sim, es


if __name__ == "__main__":
    T, B, KERNEL_SIZE = 8, 4, 3
    key = jax.random.PRNGKey(0)
    k_pe, k_par = jax.random.split(key)
    # precipitation / PET in mm, normalized XAJ parameters in [0, 1)
    p_and_e = jax.random.uniform(k_pe, (T, B, 2), jnp.float32, 0.0, 20.0)
    parameters_ts = jax.random.uniform(k_par, (T, B, 15), jnp.float32)
    nn_weights = init_nn_weights(jax.random.PRNGKey(1))

    q_sim, es = xaj_dpl_forward(p_and_e, parameters_ts, nn_weights,
                                kernel_size=KERNEL_SIZE, warmup_length=0)
    jax.block_until_ready((q_sim, es))

    assert q_sim.shape == (T, B, 1) and es.shape == (T, B, 1)
    assert bool(jnp.all(jnp.isfinite(q_sim))) and bool(jnp.all(jnp.isfinite(es)))
    print("KERNEL_OK")
</pallas_src>

<mosaic_0001>
module attributes {stable_mosaic.version = 11 : i64} {
  func.func @_xaj_fused_kernel(%arg0: i32, %arg1: i32, %arg2: memref<8x4x128xf32, #tpu.memory_space<vmem>>, %arg3: memref<16x128xf32, #tpu.memory_space<vmem>>, %arg4: memref<3x128xf32, #tpu.memory_space<vmem>>, %arg5: memref<16x128xf32, #tpu.memory_space<vmem>>, %arg6: memref<16x5xf32, #tpu.memory_space<vmem>>, %arg7: memref<8x16xf32, #tpu.memory_space<vmem>>, %arg8: memref<8x128xf32, #tpu.memory_space<vmem>>, %arg9: memref<1x8xf32, #tpu.memory_space<vmem>>, %arg10: memref<1x128xf32, #tpu.memory_space<vmem>>, %arg11: memref<8x2x128xf32, #tpu.memory_space<vmem>>, %arg12: memref<8x128xf32, #tpu.memory_space<vmem>>, %arg13: memref<2x128xf32, #tpu.memory_space<vmem>>) attributes {dimension_semantics = [#tpu.dimension_semantics<parallel>, #tpu.dimension_semantics<arbitrary>], iteration_bounds = array<i64: 1, 1>, scalar_prefetch = 0 : i64, scratch_operands = 2 : i64, tpu.core_type = #tpu.core_type<tc>, window_params = [{transform_indices = @transform_0, window_bounds = array<i64: 8, 4, 128>}, {transform_indices = @transform_1, window_bounds = array<i64: 16, 128>}, {transform_indices = @transform_2, window_bounds = array<i64: 3, 128>}, {transform_indices = @transform_3, window_bounds = array<i64: 16, 128>}, {pipeline_mode = #tpu.pipeline_mode<synchronous>, transform_indices = @transform_4, window_bounds = array<i64: 16, 5>}, {pipeline_mode = #tpu.pipeline_mode<synchronous>, transform_indices = @transform_5, window_bounds = array<i64: 8, 16>}, {transform_indices = @transform_6, window_bounds = array<i64: 8, 128>}, {pipeline_mode = #tpu.pipeline_mode<synchronous>, transform_indices = @transform_7, window_bounds = array<i64: 1, 8>}, {transform_indices = @transform_8, window_bounds = array<i64: 1, 128>}, {transform_indices = @transform_9, window_bounds = array<i64: 8, 2, 128>}]} {
    %c0 = arith.constant 0 : index
    %c0_0 = arith.constant 0 : index
    %0 = vector.load %arg3[%c0, %c0_0] : memref<16x128xf32, #tpu.memory_space<vmem>>, vector<16x128xf32>
    %1 = vector.extract_strided_slice %0 {offsets = [0, 0], sizes = [1, 128], strides = [1, 1]} : vector<16x128xf32> to vector<1x128xf32>
    %2 = vector.extract_strided_slice %0 {offsets = [1, 0], sizes = [1, 128], strides = [1, 1]} : vector<16x128xf32> to vector<1x128xf32>
    %3 = vector.extract_strided_slice %0 {offsets = [2, 0], sizes = [1, 128], strides = [1, 1]} : vector<16x128xf32> to vector<1x128xf32>
    %4 = vector.extract_strided_slice %0 {offsets = [3, 0], sizes = [1, 128], strides = [1, 1]} : vector<16x128xf32> to vector<1x128xf32>
    %5 = vector.extract_strided_slice %0 {offsets = [4, 0], sizes = [1, 128], strides = [1, 1]} : vector<16x128xf32> to vector<1x128xf32>
    %6 = vector.extract_strided_slice %0 {offsets = [5, 0], sizes = [1, 128], strides = [1, 1]} : vector<16x128xf32> to vector<1x128xf32>
    %7 = vector.extract_strided_slice %0 {offsets = [6, 0], sizes = [1, 128], strides = [1, 1]} : vector<16x128xf32> to vector<1x128xf32>
    %8 = vector.extract_strided_slice %0 {offsets = [7, 0], sizes = [1, 128], strides = [1, 1]} : vector<16x128xf32> to vector<1x128xf32>
    %9 = vector.extract_strided_slice %0 {offsets = [8, 0], sizes = [1, 128], strides = [1, 1]} : vector<16x128xf32> to vector<1x128xf32>
    %10 = vector.extract_strided_slice %0 {offsets = [12, 0], sizes = [1, 128], strides = [1, 1]} : vector<16x128xf32> to vector<1x128xf32>
    %11 = vector.extract_strided_slice %0 {offsets = [13, 0], sizes = [1, 128], strides = [1, 1]} : vector<16x128xf32> to vector<1x128xf32>
    %c0_i32 = arith.constant 0 : i32
    %12 = arith.cmpi eq, %arg1, %c0_i32 : i32
    %13 = arith.extui %12 : i1 to i32
    %c0_i32_1 = arith.constant 0 : i32
    %14 = arith.cmpi ne, %13, %c0_i32_1 : i32
    scf.if %14 {
      %65 = vector.extract_strided_slice %0 {offsets = [9, 0], sizes = [1, 128], strides = [1, 1]} : vector<16x128xf32> to vector<1x128xf32>
      %c0_55 = arith.constant 0 : index
      %c0_56 = arith.constant 0 : index
      %66 = vector.load %arg12[%c0_55, %c0_56] : memref<8x128xf32, #tpu.memory_space<vmem>>, vector<1x128xf32>
      tpu.vector_store %arg12[%c0_55, %c0_56], %65 {strides = array<i32>} : memref<8x128xf32, #tpu.memory_space<vmem>>, vector<1x128xf32>,
      %67 = vector.extract_strided_slice %0 {offsets = [10, 0], sizes = [1, 128], strides = [1, 1]} : vector<16x128xf32> to vector<1x128xf32>
      %c1_57 = arith.constant 1 : index
      %c0_58 = arith.constant 0 : index
      %68 = vector.load %arg12[%c1_57, %c0_58] : memref<8x128xf32, #tpu.memory_space<vmem>>, vector<1x128xf32>
      tpu.vector_store %arg12[%c1_57, %c0_58], %67 {strides = array<i32>} : memref<8x128xf32, #tpu.memory_space<vmem>>, vector<1x128xf32>,
      %69 = vector.extract_strided_slice %0 {offsets = [11, 0], sizes = [1, 128], strides = [1, 1]} : vector<16x128xf32> to vector<1x128xf32>
      %c2_59 = arith.constant 2 : index
      %c0_60 = arith.constant 0 : index
      %70 = vector.load %arg12[%c2_59, %c0_60] : memref<8x128xf32, #tpu.memory_space<vmem>>, vector<1x128xf32>
      tpu.vector_store %arg12[%c2_59, %c0_60], %69 {strides = array<i32>} : memref<8x128xf32, #tpu.memory_space<vmem>>, vector<1x128xf32>,
      %71 = vector.extract_strided_slice %0 {offsets = [14, 0], sizes = [1, 128], strides = [1, 1]} : vector<16x128xf32> to vector<1x128xf32>
      %c3_61 = arith.constant 3 : index
      %c0_62 = arith.constant 0 : index
      %72 = vector.load %arg12[%c3_61, %c0_62] : memref<8x128xf32, #tpu.memory_space<vmem>>, vector<1x128xf32>
      tpu.vector_store %arg12[%c3_61, %c0_62], %71 {strides = array<i32>} : memref<8x128xf32, #tpu.memory_space<vmem>>, vector<1x128xf32>,
      %73 = vector.extract_strided_slice %0 {offsets = [15, 0], sizes = [1, 128], strides = [1, 1]} : vector<16x128xf32> to vector<1x128xf32>
      %c4_63 = arith.constant 4 : index
      %c0_64 = arith.constant 0 : index
      %74 = vector.load %arg12[%c4_63, %c0_64] : memref<8x128xf32, #tpu.memory_space<vmem>>, vector<1x128xf32>
      tpu.vector_store %arg12[%c4_63, %c0_64], %73 {strides = array<i32>} : memref<8x128xf32, #tpu.memory_space<vmem>>, vector<1x128xf32>,
      %cst_65 = arith.constant 0.000000e+00 : f32
      %75 = vector.broadcast %cst_65 : f32 to vector<2x128xf32>
      %c0_66 = arith.constant 0 : index
      %c0_67 = arith.constant 0 : index
      %76 = vector.load %arg13[%c0_66, %c0_67] : memref<2x128xf32, #tpu.memory_space<vmem>>, vector<2x128xf32>
      tpu.vector_store %arg13[%c0_66, %c0_67], %75 {strides = array<i32>} : memref<2x128xf32, #tpu.memory_space<vmem>>, vector<2x128xf32>,
    } else {
    }
    %15 = arith.addf %3, %4 : vector<1x128xf32>
    %16 = arith.addf %15, %5 : vector<1x128xf32>
    %cst = arith.constant 9.99999974E-6 : f32
    %17 = vector.broadcast %cst : f32 to vector<1x128xf32>
    %18 = arith.subf %16, %17 : vector<1x128xf32>
    %cst_2 = arith.constant 1.000000e+00 : f32
    %19 = vector.broadcast %cst_2 : f32 to vector<1x128xf32>
    %20 = arith.addf %19, %1 : vector<1x128xf32>
    %21 = arith.mulf %16, %20 : vector<1x128xf32>
    %cst_3 = arith.constant 1.000000e+00 : f32
    %22 = vector.broadcast %cst_3 : f32 to vector<1x128xf32>
    %23 = arith.addf %22, %1 : vector<1x128xf32>
    %cst_4 = arith.constant 1.000000e+00 : f32
    %24 = vector.broadcast %cst_4 : f32 to vector<1x128xf32>
    %25 = arith.divf %24, %23 : vector<1x128xf32>
    %cst_5 = arith.constant 1.000000e+00 : f32
    %26 = vector.broadcast %cst_5 : f32 to vector<1x128xf32>
    %27 = arith.addf %26, %7 : vector<1x128xf32>
    %28 = arith.mulf %6, %27 : vector<1x128xf32>
    %cst_6 = arith.constant 1.000000e+00 : f32
    %29 = vector.broadcast %cst_6 : f32 to vector<1x128xf32>
    %30 = arith.addf %29, %7 : vector<1x128xf32>
    %cst_7 = arith.constant 1.000000e+00 : f32
    %31 = vector.broadcast %cst_7 : f32 to vector<1x128xf32>
    %32 = arith.divf %31, %30 : vector<1x128xf32>
    %cst_8 = arith.constant 1.000000e+00 : f32
    %33 = vector.broadcast %cst_8 : f32 to vector<1x128xf32>
    %34 = arith.subf %33, %2 : vector<1x128xf32>
    %cst_9 = arith.constant 9.99999974E-6 : f32
    %35 = vector.broadcast %cst_9 : f32 to vector<1x128xf32>
    %36 = arith.subf %6, %35 : vector<1x128xf32>
    %cst_10 = arith.constant 1.000000e+00 : f32
    %37 = vector.broadcast %cst_10 : f32 to vector<1x128xf32>
    %38 = arith.subf %37, %8 : vector<1x128xf32>
    %39 = arith.subf %38, %9 : vector<1x128xf32>
    %c0_11 = arith.constant 0 : index
    %c0_12 = arith.constant 0 : index
    %40 = vector.load %arg4[%c0_11, %c0_12] : memref<3x128xf32, #tpu.memory_space<vmem>>, vector<1x128xf32>
    %c1 = arith.constant 1 : index
    %c0_13 = arith.constant 0 : index
    %41 = vector.load %arg4[%c1, %c0_13] : memref<3x128xf32, #tpu.memory_space<vmem>>, vector<1x128xf32>
    %c2 = arith.constant 2 : index
    %c0_14 = arith.constant 0 : index
    %42 = vector.load %arg4[%c2, %c0_14] : memref<3x128xf32, #tpu.memory_space<vmem>>, vector<1x128xf32>
    %c0_15 = arith.constant 0 : index
    %c0_16 = arith.constant 0 : index
    %43 = vector.load %arg5[%c0_15, %c0_16] : memref<16x128xf32, #tpu.memory_space<vmem>>, vector<16x128xf32>
    %c0_17 = arith.constant 0 : index
    %c0_18 = arith.constant 0 : index
    %44 = vector.load %arg6[%c0_17, %c0_18] : memref<16x5xf32, #tpu.memory_space<vmem>>, vector<16x5xf32>
    %c0_19 = arith.constant 0 : index
    %c0_20 = arith.constant 0 : index
    %45 = vector.load %arg7[%c0_19, %c0_20] : memref<8x16xf32, #tpu.memory_space<vmem>>, vector<8x16xf32>
    %c0_21 = arith.constant 0 : index
    %c0_22 = arith.constant 0 : index
    %46 = vector.load %arg8[%c0_21, %c0_22] : memref<8x128xf32, #tpu.memory_space<vmem>>, vector<8x128xf32>
    %c0_23 = arith.constant 0 : index
    %c0_24 = arith.constant 0 : index
    %47 = vector.load %arg9[%c0_23, %c0_24] : memref<1x8xf32, #tpu.memory_space<vmem>>, vector<1x8xf32>
    %c0_25 = arith.constant 0 : index
    %c0_26 = arith.constant 0 : index
    %48 = vector.load %arg10[%c0_25, %c0_26] : memref<1x128xf32, #tpu.memory_space<vmem>>, vector<1x128xf32>
    %c0_27 = arith.constant 0 : index
    %c0_28 = arith.constant 0 : index
    %49 = vector.load %arg12[%c0_27, %c0_28] : memref<8x128xf32, #tpu.memory_space<vmem>>, vector<1x128xf32>
    %c1_29 = arith.constant 1 : index
    %c0_30 = arith.constant 0 : index
    %50 = vector.load %arg12[%c1_29, %c0_30] : memref<8x128xf32, #tpu.memory_space<vmem>>, vector<1x128xf32>
    %c2_31 = arith.constant 2 : index
    %c0_32 = arith.constant 0 : index
    %51 = vector.load %arg12[%c2_31, %c0_32] : memref<8x128xf32, #tpu.memory_space<vmem>>, vector<1x128xf32>
    %c3 = arith.constant 3 : index
    %c0_33 = arith.constant 0 : index
    %52 = vector.load %arg12[%c3, %c0_33] : memref<8x128xf32, #tpu.memory_space<vmem>>, vector<1x128xf32>
    %c4 = arith.constant 4 : index
    %c0_34 = arith.constant 0 : index
    %53 = vector.load %arg12[%c4, %c0_34] : memref<8x128xf32, #tpu.memory_space<vmem>>, vector<1x128xf32>
    %c0_35 = arith.constant 0 : index
    %c0_36 = arith.constant 0 : index
    %54 = vector.load %arg13[%c0_35, %c0_36] : memref<2x128xf32, #tpu.memory_space<vmem>>, vector<1x128xf32>
    %c1_37 = arith.constant 1 : index
    %c0_38 = arith.constant 0 : index
    %55 = vector.load %arg13[%c1_37, %c0_38] : memref<2x128xf32, #tpu.memory_space<vmem>>, vector<1x128xf32>
    %c0_i32_39 = arith.constant 0 : i32
    %c8_i32 = arith.constant 8 : i32
    %56 = arith.addi %c0_i32_39, %c8_i32 : i32
    %c1_i32 = arith.constant 1 : i32
    %57:7 = scf.for %arg14 = %c0_i32_39 to %56 step %c1_i32 iter_args(%arg15 = %49, %arg16 = %50, %arg17 = %51, %arg18 = %52, %arg19 = %53, %arg20 = %54, %arg21 = %55) -> (vector<1x128xf32>, vector<1x128xf32>, vector<1x128xf32>, vector<1x128xf32>, vector<1x128xf32>, vector<1x128xf32>, vector<1x128xf32>)  : i32 {
      %65 = arith.index_cast %arg14 : i32 to index
      %c0_55 = arith.constant 0 : index
      %c0_56 = arith.constant 0 : index
      %66 = vector.load %arg2[%65, %c0_55, %c0_56] : memref<8x4x128xf32, #tpu.memory_space<vmem>>, vector<1x4x128xf32>
      %67 = vector.shape_cast %66 : vector<1x4x128xf32> to vector<4x128xf32>
      %68 = vector.extract_strided_slice %67 {offsets = [0, 0], sizes = [1, 128], strides = [1, 1]} : vector<4x128xf32> to vector<1x128xf32>
      %69 = vector.extract_strided_slice %67 {offsets = [1, 0], sizes = [1, 128], strides = [1, 1]} : vector<4x128xf32> to vector<1x128xf32>
      %70 = vector.extract_strided_slice %67 {offsets = [2, 0], sizes = [1, 128], strides = [1, 1]} : vector<4x128xf32> to vector<1x128xf32>
      %71 = arith.minimumf %arg15, %18 : vector<1x128xf32>
      %72 = tpu.concatenate %67, %71 in 0 : vector<4x128xf32>, vector<1x128xf32> -> vector<5x128xf32>
      %cst_57 = arith.constant dense<0.000000e+00> : vector<16x128xf32>
      %73 = tpu.matmul %44, %72, %cst_57 {dimension_numbers = #tpu.dot_dimension_numbers<[1], [0], [0], [1], [0, 0, 1, 1], [], []>} : vector<16x5xf32>, vector<5x128xf32>, vector<16x128xf32> -> vector<16x128xf32>
      %74 = arith.addf %43, %73 : vector<16x128xf32>
      %cst_58 = arith.constant 0.000000e+00 : f32
      %75 = vector.broadcast %cst_58 : f32 to vector<16x128xf32>
      %76 = arith.maximumf %74, %75 : vector<16x128xf32>
      %cst_59 = arith.constant dense<0.000000e+00> : vector<8x128xf32>
      %77 = tpu.matmul %45, %76, %cst_59 {dimension_numbers = #tpu.dot_dimension_numbers<[1], [0], [0], [1], [0, 0, 1, 1], [], []>} : vector<8x16xf32>, vector<16x128xf32>, vector<8x128xf32> -> vector<8x128xf32>
      %78 = arith.addf %77, %46 : vector<8x128xf32>
      %cst_60 = arith.constant 0.000000e+00 : f32
      %79 = vector.broadcast %cst_60 : f32 to vector<8x128xf32>
      %80 = arith.maximumf %78, %79 : vector<8x128xf32>
      %cst_61 = arith.constant dense<0.000000e+00> : vector<1x128xf32>
      %81 = tpu.matmul %47, %80, %cst_61 {dimension_numbers = #tpu.dot_dimension_numbers<[1], [0], [0], [1], [0, 0, 1, 1], [], []>} : vector<1x8xf32>, vector<8x128xf32>, vector<1x128xf32> -> vector<1x128xf32>
      %82 = arith.addf %81, %48 : vector<1x128xf32>
      %83 = arith.addf %71, %68 : vector<1x128xf32>
      %cst_62 = arith.constant 9.99999974E-6 : f32
      %84 = vector.broadcast %cst_62 : f32 to vector<1x128xf32>
      %85 = arith.cmpf ogt, %83, %84 : vector<1x128xf32>
      %86 = arith.mulf %70, %69 : vector<1x128xf32>
      %87 = arith.minimumf %83, %86 : vector<1x128xf32>
      %cst_63 = arith.constant 0.000000e+00 : f32
      %88 = vector.broadcast %cst_63 : f32 to vector<1x128xf32>
      %89 = arith.maximumf %88, %82 : vector<1x128xf32>
      %90 = arith.minimumf %87, %89 : vector<1x128xf32>
      %cst_64 = arith.constant 0.000000e+00 : f32
      %91 = vector.broadcast %cst_64 : f32 to vector<1x128xf32>
      %92 = arith.select %85, %90, %91 : vector<1x128xi1>, vector<1x128xf32>
      %93 = arith.subf %68, %92 : vector<1x128xf32>
      %cst_65 = arith.constant 0.000000e+00 : f32
      %94 = vector.broadcast %cst_65 : f32 to vector<1x128xf32>
      %95 = arith.maximumf %93, %94 : vector<1x128xf32>
      %96 = arith.divf %71, %16 : vector<1x128xf32>
      %cst_66 = arith.constant 1.000000e+00 : f32
      %97 = vector.broadcast %cst_66 : f32 to vector<1x128xf32>
      %98 = arith.subf %97, %96 : vector<1x128xf32>
      %cst_67 = arith.constant 1.000000e-30 : f32
      %99 = vector.broadcast %cst_67 : f32 to vector<1x128xf32>
      %100 = arith.maximumf %98, %99 : vector<1x128xf32>
      %101 = math.log %100 : vector<1x128xf32>
      %102 = arith.mulf %25, %101 : vector<1x128xf32>
      %103 = math.exp %102 : vector<1x128xf32>
      %cst_68 = arith.constant 1.000000e+00 : f32
      %104 = vector.broadcast %cst_68 : f32 to vector<1x128xf32>
      %105 = arith.subf %104, %103 : vector<1x128xf32>
      %106 = arith.mulf %21, %105 : vector<1x128xf32>
      %cst_69 = arith.constant 0.000000e+00 : f32
      %107 = vector.broadcast %cst_69 : f32 to vector<1x128xf32>
      %108 = arith.cmpf ogt, %95, %107 : vector<1x128xf32>
      %109 = arith.addf %95, %106 : vector<1x128xf32>
      %110 = arith.cmpf olt, %109, %21 : vector<1x128xf32>
      %111 = arith.subf %16, %71 : vector<1x128xf32>
      %112 = arith.subf %95, %111 : vector<1x128xf32>
      %113 = arith.addf %106, %95 : vector<1x128xf32>
      %114 = arith.minimumf %113, %21 : vector<1x128xf32>
      %115 = arith.divf %114, %21 : vector<1x128xf32>
      %cst_70 = arith.constant 1.000000e+00 : f32
      %116 = vector.broadcast %cst_70 : f32 to vector<1x128xf32>
      %117 = arith.subf %116, %115 : vector<1x128xf32>
      %cst_71 = arith.constant 1.000000e+00 : f32
      %118 = vector.broadcast %cst_71 : f32 to vector<1x128xf32>
      %119 = arith.addf %118, %1 : vector<1x128xf32>
      %cst_72 = arith.constant 1.000000e-30 : f32
      %120 = vector.broadcast %cst_72 : f32 to vector<1x128xf32>
      %121 = arith.maximumf %117, %120 : vector<1x128xf32>
      %122 = math.log %121 : vector<1x128xf32>
      %123 = arith.mulf %119, %122 : vector<1x128xf32>
      %124 = math.exp %123 : vector<1x128xf32>
      %125 = arith.mulf %16, %124 : vector<1x128xf32>
      %126 = arith.addf %112, %125 : vector<1x128xf32>
      %127 = arith.subf %16, %71 : vector<1x128xf32>
      %128 = arith.subf %95, %127 : vector<1x128xf32>
      %129 = arith.select %110, %126, %128 : vector<1x128xi1>, vector<1x128xf32>
      %cst_73 = arith.constant 0.000000e+00 : f32
      %130 = vector.broadcast %cst_73 : f32 to vector<1x128xf32>
      %131 = arith.select %108, %129, %130 : vector<1x128xi1>, vector<1x128xf32>
      %cst_74 = arith.constant 0.000000e+00 : f32
      %132 = vector.broadcast %cst_74 : f32 to vector<1x128xf32>
      %133 = arith.maximumf %131, %132 : vector<1x128xf32>
      %134 = arith.mulf %95, %2 : vector<1x128xf32>
      %cst_75 = arith.constant 0.000000e+00 : f32
      %135 = vector.broadcast %cst_75 : f32 to vector<1x128xf32>
      %136 = arith.maximumf %134, %135 : vector<1x128xf32>
      %cst_76 = arith.constant 0.000000e+00 : f32
      %137 = vector.broadcast %cst_76 : f32 to vector<1x128xf32>
      %138 = arith.cmpf ogt, %133, %137 : vector<1x128xf32>
      %cst_77 = arith.constant 9.99999974E-6 : f32
      %139 = vector.broadcast %cst_77 : f32 to vector<1x128xf32>
      %140 = arith.maximumf %95, %139 : vector<1x128xf32>
      %141 = arith.divf %133, %140 : vector<1x128xf32>
      %142 = arith.select %138, %141, %arg17 : vector<1x128xi1>, vector<1x128xf32>
      %cst_78 = arith.constant 9.99999974E-6 : f32
      %cst_79 = arith.constant 1.000000e+00 : f32
      %143 = vector.broadcast %cst_78 : f32 to vector<1x128xf32>
      %144 = arith.maximumf %143, %142 : vector<1x128xf32>
      %145 = vector.broadcast %cst_79 : f32 to vector<1x128xf32>
      %146 = arith.minimumf %145, %144 : vector<1x128xf32>
      %147 = arith.mulf %arg17, %arg16 : vector<1x128xf32>
      %148 = arith.divf %147, %146 : vector<1x128xf32>
      %149 = arith.minimumf %148, %36 : vector<1x128xf32>
      %150 = arith.divf %149, %6 : vector<1x128xf32>
      %cst_80 = arith.constant 1.000000e+00 : f32
      %151 = vector.broadcast %cst_80 : f32 to vector<1x128xf32>
      %152 = arith.subf %151, %150 : vector<1x128xf32>
      %cst_81 = arith.constant 1.000000e-30 : f32
      %153 = vector.broadcast %cst_81 : f32 to vector<1x128xf32>
      %154 = arith.maximumf %152, %153 : vector<1x128xf32>
      %155 = math.log %154 : vector<1x128xf32>
      %156 = arith.mulf %32, %155 : vector<1x128xf32>
      %157 = math.exp %156 : vector<1x128xf32>
      %cst_82 = arith.constant 1.000000e+00 : f32
      %158 = vector.broadcast %cst_82 : f32 to vector<1x128xf32>
      %159 = arith.subf %158, %157 : vector<1x128xf32>
      %160 = arith.mulf %28, %159 : vector<1x128xf32>
      %cst_83 = arith.constant 0.000000e+00 : f32
      %161 = vector.broadcast %cst_83 : f32 to vector<1x128xf32>
      %162 = arith.cmpf ogt, %95, %161 : vector<1x128xf32>
      %163 = arith.addf %95, %160 : vector<1x128xf32>
      %164 = arith.cmpf olt, %163, %28 : vector<1x128xf32>
      %165 = arith.subf %95, %6 : vector<1x128xf32>
      %166 = arith.addf %165, %149 : vector<1x128xf32>
      %167 = arith.addf %95, %160 : vector<1x128xf32>
      %168 = arith.minimumf %167, %28 : vector<1x128xf32>
      %169 = arith.divf %168, %28 : vector<1x128xf32>
      %cst_84 = arith.constant 1.000000e+00 : f32
      %170 = vector.broadcast %cst_84 : f32 to vector<1x128xf32>
      %171 = arith.subf %170, %169 : vector<1x128xf32>
      %cst_85 = arith.constant 1.000000e+00 : f32
      %172 = vector.broadcast %cst_85 : f32 to vector<1x128xf32>
      %173 = arith.addf %172, %7 : vector<1x128xf32>
      %cst_86 = arith.constant 1.000000e-30 : f32
      %174 = vector.broadcast %cst_86 : f32 to vector<1x128xf32>
      %175 = arith.maximumf %171, %174 : vector<1x128xf32>
      %176 = math.log %175 : vector<1x128xf32>
      %177 = arith.mulf %173, %176 : vector<1x128xf32>
      %178 = math.exp %177 : vector<1x128xf32>
      %179 = arith.mulf %6, %178 : vector<1x128xf32>
      %180 = arith.addf %166, %179 : vector<1x128xf32>
      %181 = arith.mulf %146, %180 : vector<1x128xf32>
      %182 = arith.addf %95, %149 : vector<1x128xf32>
      %183 = arith.subf %182, %6 : vector<1x128xf32>
      %184 = arith.mulf %146, %183 : vector<1x128xf32>
      %185 = arith.select %164, %181, %184 : vector<1x128xi1>, vector<1x128xf32>
      %cst_87 = arith.constant 0.000000e+00 : f32
      %186 = vector.broadcast %cst_87 : f32 to vector<1x128xf32>
      %187 = arith.select %162, %185, %186 : vector<1x128xi1>, vector<1x128xf32>
      %188 = arith.minimumf %187, %133 : vector<1x128xf32>
      %189 = arith.subf %133, %188 : vector<1x128xf32>
      %190 = arith.divf %189, %146 : vector<1x128xf32>
      %191 = arith.addf %149, %190 : vector<1x128xf32>
      %192 = arith.minimumf %191, %6 : vector<1x128xf32>
      %193 = arith.mulf %8, %192 : vector<1x128xf32>
      %194 = arith.mulf %193, %146 : vector<1x128xf32>
      %195 = arith.mulf %9, %192 : vector<1x128xf32>
      %196 = arith.mulf %195, %146 : vector<1x128xf32>
      %197 = arith.mulf %192, %39 : vector<1x128xf32>
      %198 = arith.addf %71, %93 : vector<1x128xf32>
      %199 = arith.subf %198, %133 : vector<1x128xf32>
      %cst_88 = arith.constant 0.000000e+00 : f32
      %200 = vector.broadcast %cst_88 : f32 to vector<1x128xf32>
      %201 = arith.maximumf %200, %199 : vector<1x128xf32>
      %202 = arith.minimumf %18, %201 : vector<1x128xf32>
      %203 = arith.mulf %188, %34 : vector<1x128xf32>
      %204 = arith.mulf %194, %34 : vector<1x128xf32>
      %205 = arith.mulf %196, %34 : vector<1x128xf32>
      %206 = arith.addf %136, %203 : vector<1x128xf32>
      %207 = arith.mulf %40, %206 : vector<1x128xf32>
      %208 = arith.mulf %41, %arg20 : vector<1x128xf32>
      %209 = arith.addf %207, %208 : vector<1x128xf32>
      %210 = arith.mulf %42, %arg21 : vector<1x128xf32>
      %211 = arith.addf %209, %210 : vector<1x128xf32>
      %212 = arith.mulf %10, %arg18 : vector<1x128xf32>
      %cst_89 = arith.constant 1.000000e+00 : f32
      %213 = vector.broadcast %cst_89 : f32 to vector<1x128xf32>
      %214 = arith.subf %213, %10 : vector<1x128xf32>
      %215 = arith.mulf %214, %204 : vector<1x128xf32>
      %216 = arith.addf %212, %215 : vector<1x128xf32>
      %217 = arith.mulf %11, %arg19 : vector<1x128xf32>
      %cst_90 = arith.constant 1.000000e+00 : f32
      %218 = vector.broadcast %cst_90 : f32 to vector<1x128xf32>
      %219 = arith.subf %218, %11 : vector<1x128xf32>
      %220 = arith.mulf %219, %205 : vector<1x128xf32>
      %221 = arith.addf %217, %220 : vector<1x128xf32>
      %222 = arith.addf %211, %216 : vector<1x128xf32>
      %223 = arith.addf %222, %221 : vector<1x128xf32>
      %224 = tpu.concatenate %223, %92 in 0 : vector<1x128xf32>, vector<1x128xf32> -> vector<2x128xf32>
      %225 = arith.index_cast %arg14 : i32 to index
      %c0_91 = arith.constant 0 : index
      %c0_92 = arith.constant 0 : index
      %226 = vector.load %arg11[%225, %c0_91, %c0_92] : memref<8x2x128xf32, #tpu.memory_space<vmem>>, vector<1x2x128xf32>
      %227 = vector.shape_cast %226 : vector<1x2x128xf32> to vector<2x128xf32>
      %228 = vector.shape_cast %224 : vector<2x128xf32> to vector<1x2x128xf32>
      tpu.vector_store %arg11[%225, %c0_91, %c0_92], %228 {strides = array<i32>} : memref<8x2x128xf32, #tpu.memory_space<vmem>>, vector<1x2x128xf32>,
      scf.yield %202, %197, %146, %216, %221, %206, %arg20 : vector<1x128xf32>, vector<1x128xf32>, vector<1x128xf32>, vector<1x128xf32>, vector<1x128xf32>, vector<1x128xf32>, vector<1x128xf32>
    }
    %c8_i32_40 = arith.constant 8 : i32
    %c0_41 = arith.constant 0 : index
    %c0_42 = arith.constant 0 : index
    %58 = vector.load %arg12[%c0_41, %c0_42] : memref<8x128xf32, #tpu.memory_space<vmem>>, vector<1x128xf32>
    tpu.vector_store %arg12[%c0_41, %c0_42], %57#0 {strides = array<i32>} : memref<8x128xf32, #tpu.memory_space<vmem>>, vector<1x128xf32>,
    %c1_43 = arith.constant 1 : index
    %c0_44 = arith.constant 0 : index
    %59 = vector.load %arg12[%c1_43, %c0_44] : memref<8x128xf32, #tpu.memory_space<vmem>>, vector<1x128xf32>
    tpu.vector_store %arg12[%c1_43, %c0_44], %57#1 {strides = array<i32>} : memref<8x128xf32, #tpu.memory_space<vmem>>, vector<1x128xf32>,
    %c2_45 = arith.constant 2 : index
    %c0_46 = arith.constant 0 : index
    %60 = vector.load %arg12[%c2_45, %c0_46] : memref<8x128xf32, #tpu.memory_space<vmem>>, vector<1x128xf32>
    tpu.vector_store %arg12[%c2_45, %c0_46], %57#2 {strides = array<i32>} : memref<8x128xf32, #tpu.memory_space<vmem>>, vector<1x128xf32>,
    %c3_47 = arith.constant 3 : index
    %c0_48 = arith.constant 0 : index
    %61 = vector.load %arg12[%c3_47, %c0_48] : memref<8x128xf32, #tpu.memory_space<vmem>>, vector<1x128xf32>
    tpu.vector_store %arg12[%c3_47, %c0_48], %57#3 {strides = array<i32>} : memref<8x128xf32, #tpu.memory_space<vmem>>, vector<1x128xf32>,
    %c4_49 = arith.constant 4 : index
    %c0_50 = arith.constant 0 : index
    %62 = vector.load %arg12[%c4_49, %c0_50] : memref<8x128xf32, #tpu.memory_space<vmem>>, vector<1x128xf32>
    tpu.vector_store %arg12[%c4_49, %c0_50], %57#4 {strides = array<i32>} : memref<8x128xf32, #tpu.memory_space<vmem>>, vector<1x128xf32>,
    %c0_51 = arith.constant 0 : index
    %c0_52 = arith.constant 0 : index
    %63 = vector.load %arg13[%c0_51, %c0_52] : memref<2x128xf32, #tpu.memory_space<vmem>>, vector<1x128xf32>
    tpu.vector_store %arg13[%c0_51, %c0_52], %57#5 {strides = array<i32>} : memref<2x128xf32, #tpu.memory_space<vmem>>, vector<1x128xf32>,
    %c1_53 = arith.constant 1 : index
    %c0_54 = arith.constant 0 : index
    %64 = vector.load %arg13[%c1_53, %c0_54] : memref<2x128xf32, #tpu.memory_space<vmem>>, vector<1x128xf32>
    tpu.vector_store %arg13[%c1_53, %c0_54], %57#6 {strides = array<i32>} : memref<2x128xf32, #tpu.memory_space<vmem>>, vector<1x128xf32>,
    return
  }
  func.func @transform_0(%arg0: i32, %arg1: i32) -> (i32, i32, i32) {
    %c0_i32 = arith.constant 0 : i32
    %c0_i32_0 = arith.constant 0 : i32
    return %arg1, %c0_i32, %arg0 : i32, i32, i32
  }
  func.func @transform_1(%arg0: i32, %arg1: i32) -> (i32, i32) {
    %c0_i32 = arith.constant 0 : i32
    %c0_i32_0 = arith.constant 0 : i32
    return %c0_i32, %arg0 : i32, i32
  }
  func.func @transform_2(%arg0: i32, %arg1: i32) -> (i32, i32) {
    %c0_i32 = arith.constant 0 : i32
    %c0_i32_0 = arith.constant 0 : i32
    return %c0_i32, %arg0 : i32, i32
  }
  func.func @transform_3(%arg0: i32, %arg1: i32) -> (i32, i32) {
    %c0_i32 = arith.constant 0 : i32
    %c0_i32_0 = arith.constant 0 : i32
    return %c0_i32, %arg0 : i32, i32
  }
  func.func @transform_4(%arg0: i32, %arg1: i32) -> (i32, i32) {
    %c0_i32 = arith.constant 0 : i32
    %c0_i32_0 = arith.constant 0 : i32
    %c0_i32_1 = arith.constant 0 : i32
    return %c0_i32, %c0_i32_0 : i32, i32
  }
  func.func @transform_5(%arg0: i32, %arg1: i32) -> (i32, i32) {
    %c0_i32 = arith.constant 0 : i32
    %c0_i32_0 = arith.constant 0 : i32
    %c0_i32_1 = arith.constant 0 : i32
    return %c0_i32, %c0_i32_0 : i32, i32
  }
  func.func @transform_6(%arg0: i32, %arg1: i32) -> (i32, i32) {
    %c0_i32 = arith.constant 0 : i32
    %c0_i32_0 = arith.constant 0 : i32
    return %c0_i32, %arg0 : i32, i32
  }
  func.func @transform_7(%arg0: i32, %arg1: i32) -> (i32, i32) {
    %c0_i32 = arith.constant 0 : i32
    %c0_i32_0 = arith.constant 0 : i32
    %c0_i32_1 = arith.constant 0 : i32
    return %c0_i32, %c0_i32_0 : i32, i32
  }
  func.func @transform_8(%arg0: i32, %arg1: i32) -> (i32, i32) {
    %c0_i32 = arith.constant 0 : i32
    %c0_i32_0 = arith.constant 0 : i32
    return %c0_i32, %arg0 : i32, i32
  }
  func.func @transform_9(%arg0: i32, %arg1: i32) -> (i32, i32, i32) {
    %c0_i32 = arith.constant 0 : i32
    %c0_i32_0 = arith.constant 0 : i32
    return %arg1, %c0_i32, %arg0 : i32, i32, i32
  }
}

</mosaic_0001>

<bundles_post_ra>
// kernel: xaj_dpl_forward.1
= control target key start
LH: loop header
LB: loop body
LE: loop exit
PB: predicated region body
PF: predicated region fallthrough
CT: control target
= control target key end

     0   :  { %v809_v3 = vmov 0.0   ;;  %s1124_s0 = inlined_call_operand.vmem [shape: f32[8,4,128], index: 0, kind: input, shape index: {}]   ;;  %s1125_s1 = inlined_call_operand.vmem [shape: f32[16,128], index: 1, kind: input, shape index: {}]   ;;  %s1126_s2 = inlined_call_operand.vmem [shape: f32[3,128], index: 2, kind: input, shape index: {}]   ;;  %s1127_s3 = inlined_call_operand.vmem [shape: f32[16,128], index: 3, kind: input, shape index: {}]   ;;  %s1128_s9 = inlined_call_operand.vmem [shape: f32[8,2,128], index: 9, kind: output, shape index: {}]   ;;  %s1129_s4 = inlined_call_operand.vmem [shape: f32[16,5], index: 4, kind: input, shape index: {}]   ;;  %s1130_s5 = inlined_call_operand.vmem [shape: f32[8,16], index: 5, kind: input, shape index: {}]   ;;  %s1131_s6 = inlined_call_operand.vmem [shape: f32[8,128], index: 6, kind: input, shape index: {}]   ;;  %s1132_s7 = inlined_call_operand.vmem [shape: f32[1,8], index: 7, kind: input, shape index: {}]   ;;  %s1133_s8 = inlined_call_operand.vmem [shape: f32[1,128], index: 8, kind: input, shape index: {}]  }
   0x1   :  { %v866_v0 = vld [vmem:[%s1125_s1] sm:$0xff]  ;;  %v871_v1 = vld [vmem:[%s1125_s1 + $0x8] sm:$0xff]  ;;  %43 = vst [vmem:[#allocation3] sm:$0x3] %v809_v3 }
   0x2   :  { %v876_v2 = vld [vmem:[%s1126_s2] sm:$0x1]  ;;  %38 = vst [vmem:[#allocation2 - $0x1] sm:$0x2] %v871_v1  ;;  %v45_v4 = vrot.slane %v866_v0, 1  ;;  %v48_v5 = vrot.slane %v866_v0, 2 }
   0x3   :  { %v882_v6 = vadd.f32 1.0, %v866_v0  ;;  %v885_v7 = vsub.f32 1.0, %v866_v0  ;;  %39 = vst [vmem:[#allocation2 - $0x1] sm:$0x4] %v871_v1  ;;  %40 = vst [vmem:[#allocation2 - $0x1] sm:$0x8] %v871_v1 }
   0x4   :  { %41 = vst [vmem:[#allocation2 - $0x3] sm:$0x40] %v871_v1  ;;  %42 = vst [vmem:[#allocation2 - $0x3] sm:$0x80] %v871_v1  ;;  %v894_v8 = vld [vmem:[%s1126_s2 + $0x1] sm:$0x1]  ;;  %v47_v13 = vadd.f32 %v45_v4, %v866_v0 }
   0x5   :  { %v897_v9 = vadd.f32 -1e-05, %v866_v0  ;;  %v65_v10 = vrot.slane %v871_v1, 1  ;;  %v903_v11 = vld [vmem:[%s1126_s2 + $0x2] sm:$0x1]  ;;  %v54_v14 = vrot.slane %v882_v6, 6  ;;  %715 = vrcp.f32 %v882_v6 }
   0x6   :  { %v908_v12 = vld [vmem:[%s1127_s3] sm:$0xff]  ;;  %v59_v15 = vrot.slane %v882_v6, 1  ;;  %v919_v16 = vld [vmem:[%s1127_s3 + $0x8] sm:$0xff]  ;;  %v949_v23 = vadd.f32 %v48_v5, %v47_v13 }
   0x7   :  { %v924_v17 = vld [vmem:[%s1129_s4] sm:$0xff]  ;;  %v929_v18 = vld [vmem:[%s1129_s4 + $0x8] sm:$0xff]  ;;  %v932_v19 = vsub.f32 %v885_v7, %v65_v10 }
   0x8   :  { %v937_v20 = vld [vmem:[%s1130_s5] sm:$0xff]  ;;  %v952_v24 = vmul.f32 %v59_v15, %v866_v0  ;;  %v960_v26 = vadd.f32 -1e-05, %v949_v23  ;;  %v963_v27 = vmul.f32 %v54_v14, %v949_v23  ;;  %v84_v28 = vld [vmem:[#allocation3] sm:$0x1]   ;;  %s981_s5 = smov 0  }
   0x9   :  { %v942_v21 = vld [vmem:[%s1131_s6] sm:$0xff]  ;;  %v85_v29 = vld [vmem:[#allocation3 + $0x1] sm:$0x1]  }
   0xa   :  { %v947_v22 = vld [vmem:[%s1132_s7] sm:$0x1]  ;;  %v80_v31 = vld [vmem:[#allocation2 + $0x1] sm:$0x1]   ;;  %v81_v32 = vld [vmem:[#allocation2 + $0x2] sm:$0x1]  }
   0xb   :  { %v957_v25 = vld [vmem:[%s1133_s8] sm:$0x1]  ;;  %v82_v33 = vld [vmem:[#allocation2 + $0x3] sm:$0x1]   ;;  %v83_v34 = vld [vmem:[#allocation2 + $0x4] sm:$0x1]  }
   0xc   :  { %v79_v30 = vld [vmem:[#allocation2] sm:$0x1]  }
   0xf   :  { %v965_v35 = vpop.eup %715 }
  0x10 LB: > { %v1134_v36 = vmov %v783_v28  ;;  %v103_v37 = vrot.slane %v960_v26, 2  ;;  %vm111_vm0 = vcmask 39936   ;;  %s612_s6 = sshll.u32 %s807_s5, 2  ;;  %vm109_vm1 = vcmask 1043456   ;;  %s618_s11 = sshll.u32 %s807_s5, 1  ;;  %s807_s5 = sphi %s981_s5, %s91_s5   ;;  %v803_v30 = vphi %v79_v30, %v1142_v30   ;;  %v799_v31 = vphi %v80_v31, %v1141_v31   ;;  %v795_v32 = vphi %v81_v32, %v1140_v32   ;;  %v791_v33 = vphi %v82_v33, %v1139_v33   ;;  %v787_v34 = vphi %v83_v34, %v1138_v34   ;;  %v783_v28 = vphi %v84_v28, %v1137_v28   ;;  %v779_v29 = vphi %v85_v29, %v1136_v29  }
  0x11   : > { %629 = vmatprep.mubr.msk.f32.mxu0 %vm111_vm0, %v924_v17  ;;  %s100_s10 = scalar_lea.vmem %s1124_s0, %s612_s6  ;;  %vm118_vm2 = vcmask 1044480   ;;  %v810_v42 = vmov 0.0|0.0   ;;  %vm811_vm3 = vmmov 0   ;;  %v812_v43 = vmov 0.0   ;;  %s564_s14 = scalar_lea.vmem %s1128_s9, %s618_s11 }
  0x12   : > { %v1007_v38 = vmin.f32 %v803_v30, %v103_v37  ;;  %v101_v39 = vld [vmem:[%s100_s10] sm:$0xf]  ;;  %644 = vmatprep.subr.bf16.mxu1 %v810_v42  ;;  %636 = vmatprep.mubr.msk.f32.mxu1 %vm811_vm3, %v812_v43  ;;  %vm201_vm4 = vcmask 130048   ;;  %vm276_vm5 = vcmask 64512   ;;  %v366_v55 = vrot.slane %v949_v23, 2  ;;  %s91_s5 = sadd.s32 1, %s807_s5  }
  0x13   : > { %v353_v3 = vrot.slane %v101_v39, 7  ;;  %v388_v28 = vrot.slane %v963_v27, 2  ;;  %vm561_vm11 = vcmask 1040384   ;;  %p88_p0 = scmp.ge.s32.totalorder %s91_s5, 8  }
  0x14   : > { %v107_v40 = vrot.slane %v1007_v38, 4  ;;  %717 = vrcp.f32 %v366_v55  ;;  %v350_v14 = vadd.f32 %v1007_v38, %v101_v39  ;;  %575 = vst [vmem:[#allocation3 + $0x1] sm:$0x1] (%p88_p0), %v1134_v36 }
  0x15   : > { %v355_v10 = vmul.f32 %v353_v3, %v101_v39 }
  0x16   : > { %v110_v41 = vsel %vm109_vm1, %v101_v39, %v107_v40  ;;  %vm351_vm6 = vcmp.gt.f32.partialorder %v350_v14, 1e-05 }
  0x17   : > { %627 = vmatprep.subr.msk.mxu0 %vm118_vm2, %v110_v41  ;;  %v357_v15 = vrot.slane %v355_v10, 2 }
  0x18   : > { %628 = vmatpush3.msk.msra.mxu0 %vm118_vm2, %v110_v41 }
  0x19   : > { %630 = vmatmul.mubr.msk.f32.vlgmr.msra.gmra.mrb[0].mxu0 %vm111_vm0, %v929_v18  ;;  %639 = vmatprep.subr.mxu0 %v812_v43  ;;  %v359_v41 = vmin.f32 %v350_v14, %v357_v15 }
  0x1a   : > { %641 = vmatprep.mubr.msk.f32.mxu0 %vm811_vm3, %v812_v43 }
  0x1e   : > { %v718_v56 = vpop.eup %717 }
  0x1f   : > { %v369_v57 = vmul.f32 %v718_v56, %v1007_v38 }
  0x21   : > { %v370_v58 = vsub.f32 1.0, %v369_v57 }
  0x23   : > { %v371_v59 = vmax.f32 %v370_v58, 1e-30 }
  0x25   : > { %719 = vlog2.f32 %v371_v59 }
  0x2f   : > { %v720_v60 = vpop.eup %719 }
  0x30   : > { %v373_v61 = vmul.f32 0.6931472, %v720_v60  ;;  %v391_v60 = vrot.slane %v1007_v38, 6 }
  0x32   : > { %v374_v62 = vmul.f32 %v965_v35, %v373_v61 }
  0x34   : > { %v375_v63 = vmul.f32 1.442695, %v374_v62 }
  0x36   : > { %721 = vpow2.f32 %v375_v63 }
  0x37   : > { %723 = vrcp.f32 %v388_v28 }
  0x40   : > { %v722_v5 = vpop.eup %721 }
  0x41   : > { %v377_v13 = vsub.f32 1.0, %v722_v5 }
  0x43   : > { %v379_v37 = vrot.slane %v377_v13, 6 }
  0xec   : > { %v631_v44 = vpop.f32.mrb[0].mxu0 }
  0xed   : > { %v198_v45 = vadd.f32 %v631_v44, %v919_v16  ;;  %v188_v46 = vpop.f32.mrb[1].mxu0  ;;  %v381_v44 = vmul.f32 %v379_v37, %v963_v27 }
  0xee   : > { %v197_v47 = vadd.f32 %v188_v46, %v908_v12 }
  0xef   : > { %v200_v48 = vmax.f32 %v198_v45, 0.0 }
  0xf0   : > { %v199_v49 = vmax.f32 %v197_v47, 0.0 }
  0xf2   : > { %v645_v50 = vpack.c.bf16 %v200_v48, %v199_v49  ;;  %v384_v48 = vrot.slane %v381_v44, 2 }
  0xf4   : > { %646 = vmatpush3.bf16.msra.mxu1 %v645_v50 }
  0xf7   : > { %637 = vmatmul.mubr.msk.f32.vlgmr.msra.gmra.mrb[0].mxu1 %vm201_vm4, %v937_v20 }
 0x1ca   : > { %v271_v51 = vpop.f32.mrb[0].mxu1 }
 0x1cb   : > { %v272_v52 = vadd.f32 %v271_v51, %v942_v21  ;;  %v638_v53 = vpop.f32.mrb[1].mxu1  ;;  %v724_v51 = vpop.eup %723 }
 0x1cd   : > { %v275_v54 = vmax.f32 %v272_v52, 0.0 }
 0x1cf   : > { %640 = vmatpush3.msra.mxu0 %v275_v54 }
 0x1d0   : > { %642 = vmatmul.mubr.msk.f32.vlgmr.msra.gmra.mrb[2].mxu0 %vm276_vm5, %v947_v22 }
 0x2a3   : > { %v346_v30 = vpop.f32.mrb[2].mxu0 }
 0x2a4   : > { %v347_v40 = vadd.f32 %v346_v30, %v957_v25  ;;  %v643_v42 = vpop.f32.mrb[3].mxu0 }
 0x2a6   : > { %v360_v43 = vmax.f32 %v347_v40, 0.0 }
 0x2a8   : > { %v361_v45 = vmin.f32 %v359_v41, %v360_v43 }
 0x2aa   : > { %v1027_v46 = vsel %vm351_vm6, %v361_v45, 0.0 }
 0x2ab   : > { %v363_v47 = vsub.f32 %v101_v39, %v1027_v46  ;;  %v393_v39 = vsub.f32 %v949_v23, %v391_v60 }
 0x2ad   : > { %v1030_v49 = vmax.f32 %v363_v47, 0.0  ;;  %v395_v63 = vrot.slane %v393_v39, 2  ;;  %v510_v40 = vadd.f32 %v363_v47, %v1007_v38  ;;  %v435_v38 = vrot.slane %v866_v0, 5 }
 0x2af   : > { %v386_v50 = vadd.f32 %v384_v48, %v1030_v49  ;;  %v422_v61 = vmax.f32 %v1030_v49, 1e-05  ;;  %v397_v10 = vsub.f32 %v1030_v49, %v395_v63  ;;  %vm382_vm8 = vcmp.gt.f32.partialorder %v1030_v49, 0.0 }
 0x2b1   : > { %v398_v52 = vmin.f32 %v386_v50, %v388_v28  ;;  %vm390_vm7 = vcmp.lt.f32.partialorder %v386_v50, %v388_v28 }
 0x2b3   : > { %v400_v53 = vmul.f32 %v724_v51, %v398_v52  ;;  %v428_v52 = vmul.f32 %v795_v32, %v799_v31 }
 0x2b5   : > { %v401_v54 = vsub.f32 1.0, %v400_v53  ;;  %v432_v53 = vrot.slane %v897_v9, 5 }
 0x2b7   : > { %v402_v55 = vmax.f32 %v401_v54, 1e-30 }
 0x2b9   : > { %725 = vlog2.f32 %v402_v55 }
 0x2c3   : > { %v726_v56 = vpop.eup %725 }
 0x2c4   : > { %v404_v57 = vmul.f32 0.6931472, %v726_v56 }
 0x2c6   : > { %v405_v58 = vmul.f32 %v404_v57, %v882_v6 }
 0x2c8   : > { %v406_v59 = vmul.f32 1.442695, %v405_v58 }
 0x2ca   : > { %727 = vpow2.f32 %v406_v59 }
 0x2cb   : > { %729 = vrcp.f32 %v422_v61 }
 0x2d4   : > { %v728_v62 = vpop.eup %727 }
 0x2d5   : > { %v409_v3 = vrot.slane %v728_v62, 6  ;;  %v730_v41 = vpop.eup %729 }
 0x2d7   : > { %v411_v5 = vmul.f32 %v409_v3, %v949_v23 }
 0x2d9   : > { %v413_v13 = vrot.slane %v411_v5, 2  ;;  %v459_v5 = vrot.slane %v952_v24, 5 }
 0x2db   : > { %v415_v14 = vadd.f32 %v413_v13, %v397_v10 }
 0x2dd   : > { %v416_v15 = vsel %vm390_vm7, %v415_v14, %v397_v10 }
 0x2de   : > { %v417_v30 = vsel %vm382_vm8, %v416_v15, 0.0 }
 0x2df   : > { %v1042_v37 = vmax.f32 %v417_v30, 0.0 }
 0x2e1   : > { %vm421_vm9 = vcmp.gt.f32.partialorder %v1042_v37, 0.0  ;;  %v424_v42 = vmul.f32 %v730_v41, %v1042_v37  ;;  %v511_v43 = vsub.f32 %v510_v40, %v1042_v37 }
 0x2e3   : > { %v425_v44 = vsel %vm421_vm9, %v424_v42, %v795_v32  ;;  %v512_v28 = vmax.f32 %v511_v43, 0.0 }
 0x2e4   : > { %v426_v45 = vmax.f32 %v425_v44, 1e-05 }
 0x2e5   : > { %v514_v48 = vrot.slane %v512_v28, 6 }
 0x2e6   : > { %v1049_v50 = vmin.f32 %v426_v45, 1.0  }
 0x2e7   : > { %v1052_v30 = vmin.f32 %v960_v26, %v514_v48 }
 0x2e8   : > { %731 = vrcp.f32 %v1049_v50  ;;  %571 = vst [vmem:[#allocation2 + $0x2] sm:$0x1] (%p88_p0), %v1049_v50 }
 0x2e9   : > { %v1135_v51 = vmov %v1052_v30  ;;  %733 = vrcp.f32 %v435_v38 }
 0x2ea   : > { %v567_v47 = vrot.slane %v1135_v51, 2  }
 0x2ec   :  { %569 = vst [vmem:[#allocation2] sm:$0x1] (%p88_p0), %v567_v47 }
 0x2f2   : > { %v732_v54 = vpop.eup %731 }
 0x2f3   : > { %v430_v55 = vmul.f32 %v732_v54, %v428_v52  ;;  %v734_v56 = vpop.eup %733 }
 0x2f5   : > { %v434_v57 = vmin.f32 %v430_v55, %v432_v53 }
 0x2f7   : > { %v438_v58 = vmul.f32 %v734_v56, %v434_v57  ;;  %v486_v56 = vadd.f32 %v434_v57, %v1030_v49 }
 0x2f9   : > { %v439_v59 = vsub.f32 1.0, %v438_v58  ;;  %v462_v58 = vsub.f32 %v1030_v49, %v435_v38 }
 0x2fb   : > { %v440_v60 = vmax.f32 %v439_v59, 1e-30 }
 0x2fd   : > { %735 = vlog2.f32 %v440_v60  ;;  %v463_v60 = vadd.f32 %v462_v58, %v434_v57 }
 0x307   : > { %v736_v39 = vpop.eup %735 }
 0x308   : > { %v442_v61 = vmul.f32 0.6931472, %v736_v39 }
 0x30a   : > { %v444_v62 = vrot.slane %v442_v61, 2  ;;  %v487_v61 = vsub.f32 %v486_v56, %v435_v38  ;;  %v542_v56 = vrot.slane %v787_v34, 3 }
 0x30c   : > { %v446_v63 = vmul.f32 %v965_v35, %v444_v62 }
 0x30e   : > { %v447_v3 = vmul.f32 1.442695, %v446_v63 }
 0x310   : > { %737 = vpow2.f32 %v447_v3  ;;  %v488_v3 = vmul.f32 %v487_v61, %v1049_v50 }
 0x311   : > { %739 = vrcp.f32 %v459_v5 }
 0x31a   : > { %v738_v31 = vpop.eup %737 }
 0x31b   : > { %v449_v32 = vsub.f32 1.0, %v738_v31  ;;  %v740_v30 = vpop.eup %739 }
 0x31d   : > { %v451_v10 = vrot.slane %v449_v32, 1 }
 0x31f   : > { %v453_v13 = vmul.f32 %v451_v10, %v952_v24 }
 0x321   : > { %v455_v14 = vrot.slane %v453_v13, 5 }
 0x323   : > { %v457_v15 = vadd.f32 %v455_v14, %v1030_v49 }
 0x325   : > { %v464_v40 = vmin.f32 %v457_v15, %v459_v5  ;;  %vm461_vm10 = vcmp.lt.f32.partialorder %v457_v15, %v459_v5 }
 0x327   : > { %v466_v41 = vmul.f32 %v740_v30, %v464_v40  ;;  %v518_v30 = vrot.slane %v885_v7, 1  ;;  %v419_v40 = vmul.f32 %v1030_v49, %v45_v4  ;;  %v532_v49 = vrot.slane %v791_v33, 4 }
 0x329   : > { %v467_v42 = vsub.f32 1.0, %v466_v41  ;;  %v420_v15 = vmax.f32 %v419_v40, 0.0  ;;  %v534_v61 = vmul.f32 %v532_v49, %v871_v1 }
 0x32b   : > { %v468_v43 = vmax.f32 %v467_v42, 1e-30  ;;  %v507_v42 = vrot.slane %v932_v19, 7 }
 0x32d   : > { %741 = vlog2.f32 %v468_v43 }
 0x337   : > { %v742_v44 = vpop.eup %741 }
 0x338   : > { %v470_v28 = vmul.f32 0.6931472, %v742_v44 }
 0x33a   : > { %v472_v45 = vrot.slane %v470_v28, 2 }
 0x33c   : > { %v474_v48 = vmul.f32 %v472_v45, %v882_v6 }
 0x33e   : > { %v475_v52 = vmul.f32 1.442695, %v474_v48  ;;  %v521_v48 = vrot.slane %v885_v7, 2 }
 0x340   : > { %743 = vpow2.f32 %v475_v52 }
 0x34a   : > { %v744_v53 = vpop.eup %743 }
 0x34b   : > { %v478_v55 = vrot.slane %v744_v53, 1 }
 0x34d   : > { %v480_v59 = vmul.f32 %v478_v55, %v866_v0 }
 0x34f   : > { %v482_v39 = vrot.slane %v480_v59, 5 }
 0x351   : > { %v484_v62 = vadd.f32 %v482_v39, %v463_v60  ;;  %v527_v60 = vmul.f32 %v1134_v36, %v894_v8 }
 0x353   : > { %v485_v63 = vmul.f32 %v484_v62, %v1049_v50 }
 0x355   : > { %v489_v31 = vsel %vm461_vm10, %v485_v63, %v488_v3  ;;  %v544_v63 = vmul.f32 %v542_v56, %v871_v1 }
 0x356   : > { %v490_v32 = vsel %vm382_vm8, %v489_v31, 0.0  ;;  %v529_v31 = vmul.f32 %v779_v29, %v903_v11  ;;  %v1136_v29 = vmov %v1134_v36 }
 0x357   : > { %v491_v10 = vmin.f32 %v490_v32, %v1042_v37 }
 0x359   : > { %v492_v13 = vsub.f32 %v1042_v37, %v491_v10  ;;  %v520_v5 = vmul.f32 %v518_v30, %v491_v10 }
 0x35b   : > { %v493_v14 = vmul.f32 %v732_v54, %v492_v13  ;;  %v501_v54 = vrot.slane %v1049_v50, 1  ;;  %v525_v53 = vadd.f32 %v520_v5, %v420_v15  }
 0x35d   : > { %v494_v41 = vadd.f32 %v493_v14, %v434_v57  ;;  %v526_v59 = vmul.f32 %v525_v53, %v876_v2  ;;  %574 = vst [vmem:[#allocation3] sm:$0x1] (%p88_p0), %v525_v53 }
 0x35f   : > { %v495_v43 = vmin.f32 %v494_v41, %v435_v38  ;;  %v535_v38 = vsub.f32 1.0, %v871_v1  ;;  %v528_v3 = vadd.f32 %v527_v60, %v526_v59 }
 0x361   : > { %v497_v44 = vrot.slane %v495_v43, 1  ;;  %v504_v28 = vmul.f32 %v495_v43, %v871_v1  ;;  %v509_v45 = vmul.f32 %v507_v42, %v495_v43   ;;  %v530_v13 = vadd.f32 %v529_v31, %v528_v3 }
 0x362   : > { %v559_v42 = vrot.slane %v1027_v46, 7 }
 0x363   : > { %v499_v37 = vmul.f32 %v497_v44, %v866_v0  ;;  %v505_v52 = vmul.f32 %v504_v28, %v1049_v50  ;;  %v1137_v28 = vmov %v525_v53  ;;  %v1141_v31 = vmov %v509_v45  ;;  %570 = vst [vmem:[#allocation2 + $0x1] sm:$0x1] (%p88_p0), %v509_v45 }
 0x365   : > { %v503_v57 = vmul.f32 %v501_v54, %v499_v37  ;;  %v524_v55 = vmul.f32 %v518_v30, %v505_v52 }
 0x367   : > { %v523_v58 = vmul.f32 %v521_v48, %v503_v57  ;;  %v546_v39 = vrot.slane %v524_v55, 3 }
 0x369   : > { %v537_v62 = vrot.slane %v523_v58, 3  ;;  %v548_v33 = vmul.f32 %v546_v39, %v535_v38 }
 0x36b   : > { %v539_v32 = vmul.f32 %v537_v62, %v535_v38  ;;  %v549_v10 = vadd.f32 %v548_v33, %v544_v63 }
 0x36d   : > { %v540_v34 = vadd.f32 %v539_v32, %v534_v61  ;;  %v555_v40 = vrot.slane %v549_v10, 5   ;;  %v1140_v32 = vmov %v1049_v50 }
 0x36f   : > { %v551_v14 = vrot.slane %v540_v34, 4   ;;  %v1138_v34 = vmov %v555_v40  ;;  %573 = vst [vmem:[#allocation2 + $0x4] sm:$0x1] (%p88_p0), %v555_v40 }
 0x370   :  { %90 = sbr.rel (!%p88_p0) target bundleno = 16 (0x10), region = 69 }
 0x371   : > { %v553_v30 = vadd.f32 %v551_v14, %v530_v13  ;;  %v1139_v33 = vmov %v551_v14  ;;  %572 = vst [vmem:[#allocation2 + $0x3] sm:$0x1] (%p88_p0), %v551_v14 }
 0x373   : > { %v557_v41 = vadd.f32 %v555_v40, %v553_v30  ;;  %v1142_v30 = vmov %v567_v47 }
 0x375   : > { %v562_v43 = vsel %vm561_vm11, %v557_v41, %v559_v42 }
 0x376   : > { %565 = vst [vmem:[%s564_s14] sm:$0x3] %v562_v43 }

</bundles_post_ra>
